<compile_context>
chip_gen: v5e
topology: v5e:2x2
jax: 0.10.0
libtpu: 0.0.40
codegen_flags: <defaults>
</compile_context>

<pallas_src>
import functools

import jax
import jax.numpy as jnp
from jax.experimental import pallas as pl
from jax.experimental.pallas import tpu as pltpu


def _mlp_kernel(x_ref, w1_ref, b1_ref, w2_ref, b2_ref, w3_ref, b3_ref, o_ref):
    cdt = w1_ref.dtype  # MXU input dtype (bf16 for prepared params, f32 otherwise)
    # fc1 + ReLU: cast x to the compute dtype in vregs (free-ish VPU work),
    # accumulate f32, bias/ReLU in f32.
    x = x_ref[...].astype(cdt)
    h1 = jnp.dot(x, w1_ref[...], preferred_element_type=jnp.float32)
    h1 = jnp.maximum(h1 + b1_ref[...], 0.0).astype(cdt)
    # fc2 + ReLU
    h2 = jnp.dot(h1, w2_ref[...], preferred_element_type=jnp.float32)
    h2 = jnp.maximum(h2 + b2_ref[...], 0.0).astype(cdt)
    # fc3 (no activation); narrow (blk, out) store -> lane-masked vst, same vst
    # count as a padded store but 16x fewer HBM bytes.
    o = jnp.dot(h2, w3_ref[...], preferred_element_type=jnp.float32)
    o_ref[...] = (o + b3_ref[...]).astype(o_ref.dtype)


def _round_up(a, m):
    return (a + m - 1) // m * m


def prepare_params(params, compute_dtype=jnp.bfloat16):
    """One-time conversion (call OUTSIDE the per-step forward):
    weights -> MXU compute dtype, biases -> (1, N) float32."""
    cdt = jnp.dtype(compute_dtype)
    out = {}
    for k in ("w1", "w2", "w3"):
        out[k] = params[k].astype(cdt)
    for k in ("b1", "b2", "b3"):
        out[k] = params[k].reshape(1, -1).astype(jnp.float32)
    return out


@functools.partial(jax.jit, static_argnames=("block_b",))
def scheduling_qnetwork_forward(x, params, block_b=8192):
    """Forward pass of SchedulingQNetwork.

    x: [B, input_size] float32
    params (prepared): w1 [in,64], b1 [1,64], w2 [64,64], b2 [1,64],
                       w3 [64,out], b3 [1,out]
    """
    w1, b1 = params["w1"], params["b1"]
    w2, b2 = params["w2"], params["b2"]
    w3, b3 = params["w3"], params["b3"]

    B, in_size = x.shape
    hidden = w1.shape[1]
    out_size = w3.shape[1]

    SUB = 8  # f32 sublane granule (x tile and output tile are f32)

    # --- batch tiling: few fat steps (amortize ~0.35us/step pipeline cost).
    # Only split a single-step grid when it is big enough that v7x's second
    # TensorCore can pay for the extra step; on v5e/v6e the grid is a
    # sequential loop, so splitting small batches is pure overhead. ----------
    b_ceil = _round_up(B, SUB)
    blk = min(_round_up(block_b, SUB), b_ceil)
    if b_ceil // blk < 2 and b_ceil >= 4096:
        blk = _round_up(pl.cdiv(b_ceil, 2), SUB)
    B_pad = _round_up(B, blk)
    grid = (B_pad // blk,)

    # Row padding only (no feature padding); skipped entirely when divisible.
    x_p = x if B_pad == B else jnp.pad(x, ((0, B_pad - B), (0, 0)))

    # Advisory cost estimate (kept in sync with the unpadded traffic).
    flops = 2 * B_pad * (in_size * hidden + hidden * hidden + hidden * out_size)
    bytes_accessed = (
        x_p.size * x_p.dtype.itemsize
        + sum(a.size * a.dtype.itemsize for a in (w1, b1, w2, b2, w3, b3))
        + B_pad * out_size * 4)
    cost = pl.CostEstimate(flops=flops, transcendentals=0,
                           bytes_accessed=bytes_accessed)

    # Weights/biases: full-extent blocks with constant index maps -> DMA'd
    # once, VMEM-resident across the whole grid.
    full = lambda shape: pl.BlockSpec(shape, lambda i: (0, 0))

    out = pl.pallas_call(
        _mlp_kernel,
        out_shape=jax.ShapeDtypeStruct((B_pad, out_size), jnp.float32),
        grid_spec=pltpu.PrefetchScalarGridSpec(
            num_scalar_prefetch=0,
            grid=grid,
            in_specs=[
                pl.BlockSpec((blk, in_size), lambda i: (i, 0)),  # x tile
                full(w1.shape),  # w1
                full(b1.shape),  # b1
                full(w2.shape),  # w2
                full(b2.shape),  # b2
                full(w3.shape),  # w3
                full(b3.shape),  # b3
            ],
            out_specs=pl.BlockSpec((blk, out_size), lambda i: (i, 0)),
        ),
        compiler_params=pltpu.CompilerParams(
            dimension_semantics=("parallel",)),
        cost_estimate=cost,
    )(x_p, w1, b1, w2, b2, w3, b3)

    # Strip batch row padding only (no feature padding to strip).
    return out if B_pad == B else out[:B]


def init_params(key, input_size, output_size, hidden=64):
    """Deterministic f32 parameter init (uniform, like PyTorch default fan-in)."""
    ks = jax.random.split(key, 6)

    def lin(kw, kb, fan_in, fan_out):
        bound = 1.0 / jnp.sqrt(fan_in)
        w = jax.random.uniform(kw, (fan_in, fan_out), jnp.float32, -bound, bound)
        b = jax.random.uniform(kb, (1, fan_out), jnp.float32, -bound, bound)
        return w, b

    w1, b1 = lin(ks[0], ks[1], input_size, hidden)
    w2, b2 = lin(ks[2], ks[3], hidden, hidden)
    w3, b3 = lin(ks[4], ks[5], hidden, output_size)
    return {"w1": w1, "b1": b1, "w2": w2, "b2": b2, "w3": w3, "b3": b3}


def reference_forward(x, params):
    """Pure f32 reference."""
    h1 = jnp.maximum(x @ params["w1"] + params["b1"], 0.0)
    h2 = jnp.maximum(h1 @ params["w2"] + params["b2"], 0.0)
    return h2 @ params["w3"] + params["b3"]


def reference_forward_matched(x, prepared):
    """Reference with the same numerics as the kernel (compute-dtype dot
    inputs, f32 accumulation, f32 bias/ReLU)."""
    cdt = prepared["w1"].dtype
    h1 = jnp.dot(x.astype(cdt), prepared["w1"], preferred_element_type=jnp.float32)
    h1 = jnp.maximum(h1 + prepared["b1"], 0.0)
    h2 = jnp.dot(h1.astype(cdt), prepared["w2"], preferred_element_type=jnp.float32)
    h2 = jnp.maximum(h2 + prepared["b2"], 0.0)
    o = jnp.dot(h2.astype(cdt), prepared["w3"], preferred_element_type=jnp.float32)
    return o + prepared["b3"]


if __name__ == "__main__":
    key = jax.random.PRNGKey(0)
    k_x, k_p, k_x2 = jax.random.split(key, 3)

    batch = 32
    input_size = 16   # scheduling state features
    output_size = 8   # schedulable actions

    x = jax.random.normal(k_x, (batch, input_size), dtype=jnp.float32)
    raw_params = init_params(k_p, input_size, output_size)
    params = prepare_params(raw_params)   # one-time cast, outside the jit'd forward

    out = jax.block_until_ready(scheduling_qnetwork_forward(x, params))
    assert out.shape == (batch, output_size)

    # Kernel logic vs a reference using the same precision (bf16 MXU inputs,
    # f32 accumulation).
    ref_m = reference_forward_matched(x, params)
    assert jnp.allclose(out, ref_m, atol=1e-4, rtol=1e-4), "mismatch vs matched ref"

    # Loose sanity check against the pure-f32 reference (bf16 rounding only).
    ref_f32 = reference_forward(x, raw_params)
    assert float(jnp.max(jnp.abs(out - ref_f32))) < 0.2, "bf16 drift too large"

    # Non-multiple batch exercises the row-padding + slice path.
    x2 = jax.random.normal(k_x2, (50, input_size), dtype=jnp.float32)
    out2 = jax.block_until_ready(scheduling_qnetwork_forward(x2, params))
    ref2 = reference_forward_matched(x2, params)
    assert out2.shape == (50, output_size)
    assert jnp.allclose(out2, ref2, atol=1e-4, rtol=1e-4), "mismatch (padded batch)"

    print("KERNEL_OK")
</pallas_src>

<mosaic_0001>
module attributes {stable_mosaic.version = 11 : i64} {
  func.func @_mlp_kernel(%arg0: i32, %arg1: memref<32x16xf32, #tpu.memory_space<vmem>>, %arg2: memref<16x64xbf16, #tpu.memory_space<vmem>>, %arg3: memref<1x64xf32, #tpu.memory_space<vmem>>, %arg4: memref<64x64xbf16, #tpu.memory_space<vmem>>, %arg5: memref<1x64xf32, #tpu.memory_space<vmem>>, %arg6: memref<64x8xbf16, #tpu.memory_space<vmem>>, %arg7: memref<1x8xf32, #tpu.memory_space<vmem>>, %arg8: memref<32x8xf32, #tpu.memory_space<vmem>>) attributes {dimension_semantics = [#tpu.dimension_semantics<parallel>], iteration_bounds = array<i64: 1>, scalar_prefetch = 0 : i64, scratch_operands = 0 : i64, tpu.core_type = #tpu.core_type<tc>, window_params = [{transform_indices = @transform_0, window_bounds = array<i64: 32, 16>}, {pipeline_mode = #tpu.pipeline_mode<synchronous>, transform_indices = @transform_1, window_bounds = array<i64: 16, 64>}, {pipeline_mode = #tpu.pipeline_mode<synchronous>, transform_indices = @transform_2, window_bounds = array<i64: 1, 64>}, {pipeline_mode = #tpu.pipeline_mode<synchronous>, transform_indices = @transform_3, window_bounds = array<i64: 64, 64>}, {pipeline_mode = #tpu.pipeline_mode<synchronous>, transform_indices = @transform_4, window_bounds = array<i64: 1, 64>}, {pipeline_mode = #tpu.pipeline_mode<synchronous>, transform_indices = @transform_5, window_bounds = array<i64: 64, 8>}, {pipeline_mode = #tpu.pipeline_mode<synchronous>, transform_indices = @transform_6, window_bounds = array<i64: 1, 8>}, {transform_indices = @transform_7, window_bounds = array<i64: 32, 8>}]} {
    %c0 = arith.constant 0 : index
    %c0_0 = arith.constant 0 : index
    %0 = vector.load %arg1[%c0, %c0_0] : memref<32x16xf32, #tpu.memory_space<vmem>>, vector<32x16xf32>
    %1 = arith.truncf %0 : vector<32x16xf32> to vector<32x16xbf16>
    %c0_1 = arith.constant 0 : index
    %c0_2 = arith.constant 0 : index
    %2 = vector.load %arg2[%c0_1, %c0_2] : memref<16x64xbf16, #tpu.memory_space<vmem>>, vector<16x64xbf16>
    %cst = arith.constant dense<0.000000e+00> : vector<32x64xf32>
    %3 = tpu.matmul %1, %2, %cst {dimension_numbers = #tpu.dot_dimension_numbers<[1], [0], [0], [1], [0, 0, 1, 1], [], []>} : vector<32x16xbf16>, vector<16x64xbf16>, vector<32x64xf32> -> vector<32x64xf32>
    %c0_3 = arith.constant 0 : index
    %c0_4 = arith.constant 0 : index
    %4 = vector.load %arg3[%c0_3, %c0_4] : memref<1x64xf32, #tpu.memory_space<vmem>>, vector<1x64xf32>
    %5 = vector.broadcast %4 : vector<1x64xf32> to vector<32x64xf32>
    %6 = arith.addf %3, %5 : vector<32x64xf32>
    %cst_5 = arith.constant 0.000000e+00 : f32
    %7 = vector.broadcast %cst_5 : f32 to vector<32x64xf32>
    %8 = arith.maximumf %6, %7 : vector<32x64xf32>
    %9 = arith.truncf %8 : vector<32x64xf32> to vector<32x64xbf16>
    %c0_6 = arith.constant 0 : index
    %c0_7 = arith.constant 0 : index
    %10 = vector.load %arg4[%c0_6, %c0_7] : memref<64x64xbf16, #tpu.memory_space<vmem>>, vector<64x64xbf16>
    %cst_8 = arith.constant dense<0.000000e+00> : vector<32x64xf32>
    %11 = tpu.matmul %9, %10, %cst_8 {dimension_numbers = #tpu.dot_dimension_numbers<[1], [0], [0], [1], [0, 0, 1, 1], [], []>} : vector<32x64xbf16>, vector<64x64xbf16>, vector<32x64xf32> -> vector<32x64xf32>
    %c0_9 = arith.constant 0 : index
    %c0_10 = arith.constant 0 : index
    %12 = vector.load %arg5[%c0_9, %c0_10] : memref<1x64xf32, #tpu.memory_space<vmem>>, vector<1x64xf32>
    %13 = vector.broadcast %12 : vector<1x64xf32> to vector<32x64xf32>
    %14 = arith.addf %11, %13 : vector<32x64xf32>
    %cst_11 = arith.constant 0.000000e+00 : f32
    %15 = vector.broadcast %cst_11 : f32 to vector<32x64xf32>
    %16 = arith.maximumf %14, %15 : vector<32x64xf32>
    %17 = arith.truncf %16 : vector<32x64xf32> to vector<32x64xbf16>
    %c0_12 = arith.constant 0 : index
    %c0_13 = arith.constant 0 : index
    %18 = vector.load %arg6[%c0_12, %c0_13] : memref<64x8xbf16, #tpu.memory_space<vmem>>, vector<64x8xbf16>
    %cst_14 = arith.constant dense<0.000000e+00> : vector<32x8xf32>
    %19 = tpu.matmul %17, %18, %cst_14 {dimension_numbers = #tpu.dot_dimension_numbers<[1], [0], [0], [1], [0, 0, 1, 1], [], []>} : vector<32x64xbf16>, vector<64x8xbf16>, vector<32x8xf32> -> vector<32x8xf32>
    %c0_15 = arith.constant 0 : index
    %c0_16 = arith.constant 0 : index
    %20 = vector.load %arg7[%c0_15, %c0_16] : memref<1x8xf32, #tpu.memory_space<vmem>>, vector<1x8xf32>
    %21 = vector.broadcast %20 : vector<1x8xf32> to vector<32x8xf32>
    %22 = arith.addf %19, %21 : vector<32x8xf32>
    %c0_17 = arith.constant 0 : index
    %c0_18 = arith.constant 0 : index
    %23 = vector.load %arg8[%c0_17, %c0_18] : memref<32x8xf32, #tpu.memory_space<vmem>>, vector<32x8xf32>
    tpu.vector_store %arg8[%c0_17, %c0_18], %22 {strides = array<i32>} : memref<32x8xf32, #tpu.memory_space<vmem>>, vector<32x8xf32>,
    return
  }
  func.func @transform_0(%arg0: i32) -> (i32, i32) {
    %c0_i32 = arith.constant 0 : i32
    %c0_i32_0 = arith.constant 0 : i32
    return %arg0, %c0_i32 : i32, i32
  }
  func.func @transform_1(%arg0: i32) -> (i32, i32) {
    %c0_i32 = arith.constant 0 : i32
    %c0_i32_0 = arith.constant 0 : i32
    %c0_i32_1 = arith.constant 0 : i32
    return %c0_i32, %c0_i32_0 : i32, i32
  }
  func.func @transform_2(%arg0: i32) -> (i32, i32) {
    %c0_i32 = arith.constant 0 : i32
    %c0_i32_0 = arith.constant 0 : i32
    %c0_i32_1 = arith.constant 0 : i32
    return %c0_i32, %c0_i32_0 : i32, i32
  }
  func.func @transform_3(%arg0: i32) -> (i32, i32) {
    %c0_i32 = arith.constant 0 : i32
    %c0_i32_0 = arith.constant 0 : i32
    %c0_i32_1 = arith.constant 0 : i32
    return %c0_i32, %c0_i32_0 : i32, i32
  }
  func.func @transform_4(%arg0: i32) -> (i32, i32) {
    %c0_i32 = arith.constant 0 : i32
    %c0_i32_0 = arith.constant 0 : i32
    %c0_i32_1 = arith.constant 0 : i32
    return %c0_i32, %c0_i32_0 : i32, i32
  }
  func.func @transform_5(%arg0: i32) -> (i32, i32) {
    %c0_i32 = arith.constant 0 : i32
    %c0_i32_0 = arith.constant 0 : i32
    %c0_i32_1 = arith.constant 0 : i32
    return %c0_i32, %c0_i32_0 : i32, i32
  }
  func.func @transform_6(%arg0: i32) -> (i32, i32) {
    %c0_i32 = arith.constant 0 : i32
    %c0_i32_0 = arith.constant 0 : i32
    %c0_i32_1 = arith.constant 0 : i32
    return %c0_i32, %c0_i32_0 : i32, i32
  }
  func.func @transform_7(%arg0: i32) -> (i32, i32) {
    %c0_i32 = arith.constant 0 : i32
    %c0_i32_0 = arith.constant 0 : i32
    return %arg0, %c0_i32 : i32, i32
  }
}

</mosaic_0001>

<bundles_post_ra>
// kernel: scheduling_qnetwork_forward.1
= control target key start
LH: loop header
LB: loop body
LE: loop exit
PB: predicated region body
PF: predicated region fallthrough
CT: control target
= control target key end

     0   :  { %vm45_vm0 = vcmask 130048   ;;  %vm113_vm1 = vcmask 523264   ;;  %vm206_vm2 = vcmask 64512   ;;  %s377_s1 = inlined_call_operand.vmem [shape: bf16[16,64], index: 1, kind: input, shape index: {}]   ;;  %s378_s0 = inlined_call_operand.vmem [shape: f32[32,16], index: 0, kind: input, shape index: {}]   ;;  %s379_s2 = inlined_call_operand.vmem [shape: f32[1,64], index: 2, kind: input, shape index: {}]   ;;  %s380_s4 = inlined_call_operand.vmem [shape: f32[1,64], index: 4, kind: input, shape index: {}]   ;;  %s381_s3 = inlined_call_operand.vmem [shape: bf16[64,64], index: 3, kind: input, shape index: {}]   ;;  %s382_s6 = inlined_call_operand.vmem [shape: f32[1,8], index: 6, kind: input, shape index: {}]   ;;  %s383_s5 = inlined_call_operand.vmem [shape: bf16[64,8], index: 5, kind: input, shape index: {}]   ;;  %s384_s7 = inlined_call_operand.vmem [shape: f32[32,8], index: 7, kind: output, shape index: {}]  }
   0x1   :  { %v257_v0 = vld [vmem:[%s377_s1] sm:$0xff]  ;;  %v28_v2 = vld [vmem:[%s378_s0 + $0x8] sm:$0xff]  ;;  %v29_v4 = vld [vmem:[%s378_s0 + $0x10] sm:$0xff] }
   0x2   :  { %v27_v1 = vld [vmem:[%s378_s0] sm:$0xff]  ;;  %59 = vmatpush.bf16.msra.mxu0 %v257_v0  ;;  %v30_v5 = vld [vmem:[%s378_s0 + $0x18] sm:$0xff]  ;;  %v260_v8 = vld [vmem:[%s381_s3 + $0x10] sm:$0xff] }
   0x3   :  { %v31_v3 = vpack.c.bf16 %v28_v2, %v27_v1  ;;  %v32_v6 = vpack.c.bf16 %v30_v5, %v29_v4  ;;  %v261_v7 = vld [vmem:[%s381_s3 + $0x18] sm:$0xff]  ;;  %v259_v9 = vld [vmem:[%s381_s3 + $0x8] sm:$0xff]  ;;  %v258_v10 = vld [vmem:[%s381_s3] sm:$0xff] }
   0x4   :  { %124 = vmatpush.bf16.msra.mxu1 %v261_v7  ;;  %266 = vmatpush.bf16.msra.mxu3 %v261_v7  ;;  %v270_v12 = vld [vmem:[%s379_s2] ss:$0 sm:$0xff]  ;;  %v265_v26 = vld [vmem:[%s383_s5 + $0x18] sm:$0xff]  ;;  %v264_v27 = vld [vmem:[%s383_s5 + $0x10] sm:$0xff] }
   0x5   :  { %219 = vmatmul.msk.bf16.vlgmr.msra.gmra.mxu0 %vm45_vm0, %v31_v3  ;;  %191 = vmatpush.bf16.msra.mxu2 %v265_v26  ;;  %v263_v28 = vld [vmem:[%s383_s5 + $0x8] sm:$0xff]  ;;  %v262_v29 = vld [vmem:[%s383_s5] sm:$0xff] }
   0x6   :  { %v271_v31 = vld [vmem:[%s380_s4] ss:$0 sm:$0xff] }
   0x7   :  { %v272_v45 = vld [vmem:[%s382_s6] ss:$0 sm:$0xff] }
   0x8   :  { %125 = vmatpush.bf16.msra.mxu1 %v260_v8  ;;  %267 = vmatpush.bf16.msra.mxu3 %v260_v8 }
   0x9   :  { %192 = vmatpush.bf16.msra.mxu2 %v264_v27 }
   0xc   :  { %126 = vmatpush.bf16.msra.mxu1 %v259_v9  ;;  %268 = vmatpush.bf16.msra.mxu3 %v259_v9 }
   0xd   :  { %193 = vmatpush.bf16.msra.mxu2 %v263_v28 }
  0x10   :  { %127 = vmatpush.bf16.msra.mxu1 %v258_v10  ;;  %269 = vmatpush.bf16.msra.mxu3 %v258_v10 }
  0x11   :  { %194 = vmatpush.bf16.msra.mxu2 %v262_v29 }
  0x15   :  { %220 = vmatmul.msk.bf16.gmra.mxu0 %vm45_vm0, %v32_v6 }
  0x82   :  { %v61_v11 = vpop.f32.mrf.mxu0 }
  0x83   :  { %v62_v13 = vadd.f32 %v270_v12, %v61_v11 }
  0x85   :  { %v71_v16 = vmax.f32 %v62_v13, 0.0 }
  0x8a   :  { %v63_v14 = vpop.f32.mrf.mxu0 }
  0x8b   :  { %v64_v15 = vadd.f32 %v270_v12, %v63_v14 }
  0x8d   :  { %v72_v17 = vmax.f32 %v64_v15, 0.0 }
  0x8f   :  { %v75_v18 = vpack.c.bf16 %v72_v17, %v71_v16 }
  0x91   :  { %237 = vmatmul.msk.bf16.vlgmr.msra.gmra.mxu1 %vm113_vm1, %v75_v18 }
  0x92   :  { %v66_v19 = vpop.f32.mrf.mxu0 }
  0x93   :  { %v67_v20 = vadd.f32 %v270_v12, %v66_v19 }
  0x95   :  { %v73_v23 = vmax.f32 %v67_v20, 0.0 }
  0x9a   :  { %v68_v21 = vpop.f32.mrf.mxu0 }
  0x9b   :  { %v69_v22 = vadd.f32 %v270_v12, %v68_v21 }
  0x9d   :  { %v74_v24 = vmax.f32 %v69_v22, 0.0 }
  0x9f   :  { %v76_v25 = vpack.c.bf16 %v74_v24, %v73_v23 }
  0xa1   :  { %238 = vmatmul.msk.bf16.vlgmr.msra.gmra.mxu3 %vm113_vm1, %v76_v25 }
 0x10e   :  { %v129_v30 = vpop.f32.mrf.mxu1 }
 0x10f   :  { %v130_v32 = vadd.f32 %v271_v31, %v129_v30 }
 0x111   :  { %v139_v35 = vmax.f32 %v130_v32, 0.0 }
 0x116   :  { %v131_v33 = vpop.f32.mrf.mxu1 }
 0x117   :  { %v132_v34 = vadd.f32 %v271_v31, %v131_v33 }
 0x119   :  { %v140_v36 = vmax.f32 %v132_v34, 0.0 }
 0x11b   :  { %v143_v37 = vpack.c.bf16 %v140_v36, %v139_v35 }
 0x11d   :  { %255 = vmatmul.msk.bf16.vlgmr.msra.gmra.mxu2 %vm113_vm1, %v143_v37 }
 0x124   :  { %v134_v38 = vpop.f32.mrf.mxu3 }
 0x125   :  { %v135_v39 = vadd.f32 %v271_v31, %v134_v38 }
 0x127   :  { %v141_v42 = vmax.f32 %v135_v39, 0.0 }
 0x12c   :  { %v136_v40 = vpop.f32.mrf.mxu3 }
 0x12d   :  { %v137_v41 = vadd.f32 %v271_v31, %v136_v40 }
 0x12f   :  { %v142_v43 = vmax.f32 %v137_v41, 0.0 }
 0x131   :  { %v144_v44 = vpack.c.bf16 %v142_v43, %v141_v42 }
 0x133   :  { %256 = vmatmul.msk.bf16.gmra.mxu2 %vm113_vm1, %v144_v44 }
 0x1a0   :  { %v196_v46 = vpop.f32.mrf.mxu2 }
 0x1a1   :  { %v197_v47 = vadd.f32 %v272_v45, %v196_v46 }
 0x1a3   :  { %207 = vst.msk [vmem:[%s384_s7] sm:$0xff] %vm206_vm2, %v197_v47 }
 0x1a8   :  { %v198_v48 = vpop.f32.mrf.mxu2 }
 0x1a9   :  { %v199_v49 = vadd.f32 %v272_v45, %v198_v48 }
 0x1ab   :  { %208 = vst.msk [vmem:[%s384_s7 + $0x8] sm:$0xff] %vm206_vm2, %v199_v49 }
 0x1b6   :  { %v201_v50 = vpop.f32.mrf.mxu2 }
 0x1b7   :  { %v202_v51 = vadd.f32 %v272_v45, %v201_v50 }
 0x1b9   :  { %209 = vst.msk [vmem:[%s384_s7 + $0x10] sm:$0xff] %vm206_vm2, %v202_v51 }
 0x1be   :  { %v203_v52 = vpop.f32.mrf.mxu2 }
 0x1bf   :  { %v204_v53 = vadd.f32 %v272_v45, %v203_v52 }
 0x1c1   :  { %210 = vst.msk [vmem:[%s384_s7 + $0x18] sm:$0xff] %vm206_vm2, %v204_v53 }

</bundles_post_ra>
